<compile_context>
chip_gen: v7x
topology: tpu7x:2x2x1
jax: 0.10.0
libtpu: 0.0.40
codegen_flags: <defaults>
</compile_context>

<pallas_src>
import functools

import jax
import jax.numpy as jnp
from jax.experimental import pallas as pl
from jax.experimental.pallas import tpu as pltpu


def _round_up(a, m):
    return ((a + m - 1) // m) * m


def patch_cluster_kernel(x_ref, s_ref, wt_ref, b_ref, o_ref, *,
                         eps, neg_slope, normalize, apply_gcn):
    # x_ref : (1, tn, Cp)    s_ref : (1, M, Cp)
    # wt_ref: (Cp, Cp)  (already transposed: out = h @ wt + b)
    # b_ref : (1, Cp)
    x_raw = x_ref[0]                       # (tn, Cp), stored dtype
    s_raw = s_ref[0]                       # (M,  Cp), stored dtype
    x = x_raw.astype(jnp.float32)
    s = s_raw.astype(jnp.float32)

    if normalize:                          # torch: v / (||v||_2 + 1e-5)
        xq = x / (jnp.sqrt(jnp.sum(x * x, axis=-1, keepdims=True)) + eps)
        sq = s / (jnp.sqrt(jnp.sum(s * s, axis=-1, keepdims=True)) + eps)
    else:
        xq, sq = x, s

    # correlation = xq @ sq^T, contracting the feature (lane) dim -> (tn, M)
    corr = jax.lax.dot_general(
        xq, sq, (((1,), (1,)), ((), ())), preferred_element_type=jnp.float32)

    # row softmax over the source dimension
    m = jnp.max(corr, axis=-1, keepdims=True)
    e = jnp.exp(corr - m)
    p = e / jnp.sum(e, axis=-1, keepdims=True)

    # clustered = softmax(corr) @ source  (un-normalized source, as in torch)
    h = jnp.dot(p.astype(s_raw.dtype), s_raw, preferred_element_type=jnp.float32)

    if apply_gcn:
        # 1x1 Conv1d over channels (+ bias) followed by LeakyReLU(0.2)
        wt = wt_ref[...]
        g = jnp.dot(h.astype(wt.dtype), wt, preferred_element_type=jnp.float32)
        g = g + b_ref[...].astype(jnp.float32)
        h = jnp.where(g >= 0, g, neg_slope * g)

    o_ref[0] = h.astype(o_ref.dtype)


def patch_cluster(x, source, gcn_w=None, gcn_b=None, *, mode='GCN',
                  eps=1e-5, neg_slope=0.2, tn=None):
    """x: [B, N, C], source: [B, M, C].
    gcn_w: [C, C]  (Conv1d(C, C, 1) weight, squeezed), gcn_b: [C]  (GCN mode only)."""
    if mode == 'Transformer':
        # TODO(synk): Transformer mode (AttentionalPropagation) not implemented.
        raise NotImplementedError("Transformer mode is not implemented in Pallas.")
    normalize = mode in ('Cosine', 'GCN')
    apply_gcn = (mode == 'GCN')

    B, N, C = x.shape
    _, M, _ = source.shape
    if not apply_gcn:
        gcn_w = jnp.zeros((C, C), x.dtype)
        gcn_b = jnp.zeros((C,), x.dtype)

    Cp = _round_up(C, 128)                        # lane-dense feature dim
    if tn is None:
        tn = min(256, _round_up(N, 8))            # capped row tile
    tn = _round_up(tn, 8)
    Np = _round_up(N, tn)                         # pad tail rows instead of dropping them

    xp = jnp.pad(x, ((0, 0), (0, Np - N), (0, Cp - C)))
    sp = jnp.pad(source, ((0, 0), (0, 0), (0, Cp - C)))
    wt = jnp.pad(gcn_w.T, ((0, Cp - C), (0, Cp - C)))   # pre-transposed: h @ wt
    bp = jnp.pad(gcn_b, (0, Cp - C)).reshape(1, Cp)

    grid = (B, Np // tn)

    out = pl.pallas_call(
        functools.partial(patch_cluster_kernel, eps=eps, neg_slope=neg_slope,
                          normalize=normalize, apply_gcn=apply_gcn),
        out_shape=jax.ShapeDtypeStruct((B, Np, Cp), x.dtype),
        grid_spec=pltpu.PrefetchScalarGridSpec(
            num_scalar_prefetch=0,
            grid=grid,
            in_specs=[
                pl.BlockSpec((1, tn, Cp), lambda b, i: (b, i, 0)),   # x row tile
                pl.BlockSpec((1, M, Cp), lambda b, i: (b, 0, 0)),    # source (per-batch, resident)
                pl.BlockSpec((Cp, Cp), lambda b, i: (0, 0)),         # W^T (resident)
                pl.BlockSpec((1, Cp), lambda b, i: (0, 0)),          # bias (resident)
            ],
            out_specs=pl.BlockSpec((1, tn, Cp), lambda b, i: (b, i, 0)),
        ),
        compiler_params=pltpu.CompilerParams(
            dimension_semantics=("parallel", "parallel"),
            vmem_limit_bytes=64 * 1024 * 1024,
        ),
    )(xp, sp, wt, bp)

    return out[:, :N, :C]


def patch_cluster_ref(x, source, gcn_w, gcn_b, *, mode='GCN', eps=1e-5, neg_slope=0.2):
    if mode in ('Cosine', 'GCN'):
        xn = x / (jnp.linalg.norm(x, axis=-1, keepdims=True) + eps)
        sn = source / (jnp.linalg.norm(source, axis=-1, keepdims=True) + eps)
        corr = jnp.einsum('bnc,bmc->bnm', xn, sn)
    else:
        corr = jnp.einsum('bnc,bmc->bnm', x, source)
    p = jax.nn.softmax(corr, axis=-1)
    out = jnp.einsum('bnm,bmc->bnc', p, source)
    if mode == 'GCN':
        g = out @ gcn_w.T + gcn_b
        out = jnp.where(g >= 0, g, neg_slope * g)
    return out


if __name__ == "__main__":
    # Small shapes consistent with the module: x [B, N, C], source [B, M, C]
    B, N, M, C = 2, 16, 16, 32

    key = jax.random.PRNGKey(0)
    kx, ks, kw, kb = jax.random.split(key, 4)
    x = jax.random.normal(kx, (B, N, C), jnp.float32)
    source = jax.random.normal(ks, (B, M, C), jnp.float32)

    # Conv1d(C, C, 1) parameters (weight squeezed to [C_out, C_in])
    bound = 1.0 / (C ** 0.5)
    gcn_w = jax.random.uniform(kw, (C, C), jnp.float32, -bound, bound)
    gcn_b = jax.random.uniform(kb, (C,), jnp.float32, -bound, bound)

    out = patch_cluster(x, source, gcn_w, gcn_b, mode='GCN')
    out = jax.block_until_ready(out)

    ref = patch_cluster_ref(x, source, gcn_w, gcn_b, mode='GCN')
    assert out.shape == (B, N, C) and out.dtype == x.dtype
    assert jnp.allclose(out, ref, atol=1e-4, rtol=1e-4), float(
        jnp.max(jnp.abs(out - ref)))

    print("KERNEL_OK")
</pallas_src>

<mosaic_0001>
module attributes {stable_mosaic.version = 11 : i64} {
  func.func @patch_cluster_kernel(%arg0: i32, %arg1: i32, %arg2: memref<1x16x128xf32, #tpu.memory_space<vmem>>, %arg3: memref<1x16x128xf32, #tpu.memory_space<vmem>>, %arg4: memref<128x128xf32, #tpu.memory_space<vmem>>, %arg5: memref<1x128xf32, #tpu.memory_space<vmem>>, %arg6: memref<1x16x128xf32, #tpu.memory_space<vmem>>) attributes {dimension_semantics = [#tpu.dimension_semantics<parallel>, #tpu.dimension_semantics<parallel>], iteration_bounds = array<i64: 2, 1>, scalar_prefetch = 0 : i64, scratch_operands = 0 : i64, tpu.core_type = #tpu.core_type<tc>, window_params = [{transform_indices = @transform_0, window_bounds = array<i64: 1, 16, 128>}, {transform_indices = @transform_1, window_bounds = array<i64: 1, 16, 128>}, {pipeline_mode = #tpu.pipeline_mode<synchronous>, transform_indices = @transform_2, window_bounds = array<i64: 128, 128>}, {pipeline_mode = #tpu.pipeline_mode<synchronous>, transform_indices = @transform_3, window_bounds = array<i64: 1, 128>}, {transform_indices = @transform_4, window_bounds = array<i64: 1, 16, 128>}]} {
    %c0 = arith.constant 0 : index
    %c0_0 = arith.constant 0 : index
    %c0_1 = arith.constant 0 : index
    %0 = vector.load %arg2[%c0, %c0_0, %c0_1] : memref<1x16x128xf32, #tpu.memory_space<vmem>>, vector<1x16x128xf32>
    %1 = vector.shape_cast %0 : vector<1x16x128xf32> to vector<16x128xf32>
    %c0_2 = arith.constant 0 : index
    %c0_3 = arith.constant 0 : index
    %c0_4 = arith.constant 0 : index
    %2 = vector.load %arg3[%c0_2, %c0_3, %c0_4] : memref<1x16x128xf32, #tpu.memory_space<vmem>>, vector<1x16x128xf32>
    %3 = vector.shape_cast %2 : vector<1x16x128xf32> to vector<16x128xf32>
    %4 = arith.mulf %1, %1 : vector<16x128xf32>
    %cst = arith.constant dense<0.000000e+00> : vector<16xf32>
    %5 = vector.multi_reduction <add>, %4, %cst [1] : vector<16x128xf32> to vector<16xf32>
    %6 = vector.shape_cast %5 : vector<16xf32> to vector<16x1xf32>
    %7 = math.sqrt %6 : vector<16x1xf32>
    %cst_5 = arith.constant 9.99999974E-6 : f32
    %8 = vector.broadcast %cst_5 : f32 to vector<16x1xf32>
    %9 = arith.addf %7, %8 : vector<16x1xf32>
    %10 = vector.broadcast %9 : vector<16x1xf32> to vector<16x128xf32>
    %11 = arith.divf %1, %10 : vector<16x128xf32>
    %12 = arith.mulf %3, %3 : vector<16x128xf32>
    %cst_6 = arith.constant dense<0.000000e+00> : vector<16xf32>
    %13 = vector.multi_reduction <add>, %12, %cst_6 [1] : vector<16x128xf32> to vector<16xf32>
    %14 = vector.shape_cast %13 : vector<16xf32> to vector<16x1xf32>
    %15 = math.sqrt %14 : vector<16x1xf32>
    %cst_7 = arith.constant 9.99999974E-6 : f32
    %16 = vector.broadcast %cst_7 : f32 to vector<16x1xf32>
    %17 = arith.addf %15, %16 : vector<16x1xf32>
    %18 = vector.broadcast %17 : vector<16x1xf32> to vector<16x128xf32>
    %19 = arith.divf %3, %18 : vector<16x128xf32>
    %cst_8 = arith.constant dense<0.000000e+00> : vector<16x16xf32>
    %20 = tpu.matmul %11, %19, %cst_8 {dimension_numbers = #tpu.dot_dimension_numbers<[1], [1], [0], [0], [0, 0, 1, 0], [], []>} : vector<16x128xf32>, vector<16x128xf32>, vector<16x16xf32> -> vector<16x16xf32>
    %cst_9 = arith.constant dense<0xFF800000> : vector<16xf32>
    %21 = vector.multi_reduction <maximumf>, %20, %cst_9 [1] : vector<16x16xf32> to vector<16xf32>
    %22 = vector.shape_cast %21 : vector<16xf32> to vector<16x1xf32>
    %23 = vector.broadcast %22 : vector<16x1xf32> to vector<16x16xf32>
    %24 = arith.subf %20, %23 : vector<16x16xf32>
    %25 = math.exp %24 : vector<16x16xf32>
    %cst_10 = arith.constant dense<0.000000e+00> : vector<16xf32>
    %26 = vector.multi_reduction <add>, %25, %cst_10 [1] : vector<16x16xf32> to vector<16xf32>
    %27 = vector.shape_cast %26 : vector<16xf32> to vector<16x1xf32>
    %28 = vector.broadcast %27 : vector<16x1xf32> to vector<16x16xf32>
    %29 = arith.divf %25, %28 : vector<16x16xf32>
    %cst_11 = arith.constant dense<0.000000e+00> : vector<16x128xf32>
    %30 = tpu.matmul %29, %3, %cst_11 {dimension_numbers = #tpu.dot_dimension_numbers<[1], [0], [0], [1], [0, 0, 1, 1], [], []>} : vector<16x16xf32>, vector<16x128xf32>, vector<16x128xf32> -> vector<16x128xf32>
    %c0_12 = arith.constant 0 : index
    %c0_13 = arith.constant 0 : index
    %31 = vector.load %arg4[%c0_12, %c0_13] : memref<128x128xf32, #tpu.memory_space<vmem>>, vector<128x128xf32>
    %cst_14 = arith.constant dense<0.000000e+00> : vector<16x128xf32>
    %32 = tpu.matmul %30, %31, %cst_14 {dimension_numbers = #tpu.dot_dimension_numbers<[1], [0], [0], [1], [0, 0, 1, 1], [], []>} : vector<16x128xf32>, vector<128x128xf32>, vector<16x128xf32> -> vector<16x128xf32>
    %c0_15 = arith.constant 0 : index
    %c0_16 = arith.constant 0 : index
    %33 = vector.load %arg5[%c0_15, %c0_16] : memref<1x128xf32, #tpu.memory_space<vmem>>, vector<1x128xf32>
    %34 = vector.broadcast %33 : vector<1x128xf32> to vector<16x128xf32>
    %35 = arith.addf %32, %34 : vector<16x128xf32>
    %cst_17 = arith.constant 0.000000e+00 : f32
    %36 = vector.broadcast %cst_17 : f32 to vector<16x128xf32>
    %37 = arith.cmpf oge, %35, %36 : vector<16x128xf32>
    %cst_18 = arith.constant 2.000000e-01 : f32
    %38 = vector.broadcast %cst_18 : f32 to vector<16x128xf32>
    %39 = arith.mulf %38, %35 : vector<16x128xf32>
    %40 = arith.select %37, %35, %39 : vector<16x128xi1>, vector<16x128xf32>
    %c0_19 = arith.constant 0 : index
    %c0_20 = arith.constant 0 : index
    %c0_21 = arith.constant 0 : index
    %41 = vector.load %arg6[%c0_19, %c0_20, %c0_21] : memref<1x16x128xf32, #tpu.memory_space<vmem>>, vector<1x16x128xf32>
    %42 = vector.shape_cast %41 : vector<1x16x128xf32> to vector<16x128xf32>
    %43 = vector.shape_cast %40 : vector<16x128xf32> to vector<1x16x128xf32>
    tpu.vector_store %arg6[%c0_19, %c0_20, %c0_21], %43 {strides = array<i32>} : memref<1x16x128xf32, #tpu.memory_space<vmem>>, vector<1x16x128xf32>,
    return
  }
  func.func @transform_0(%arg0: i32, %arg1: i32) -> (i32, i32, i32) {
    %c0_i32 = arith.constant 0 : i32
    %c0_i32_0 = arith.constant 0 : i32
    return %arg0, %arg1, %c0_i32 : i32, i32, i32
  }
  func.func @transform_1(%arg0: i32, %arg1: i32) -> (i32, i32, i32) {
    %c0_i32 = arith.constant 0 : i32
    %c0_i32_0 = arith.constant 0 : i32
    %c0_i32_1 = arith.constant 0 : i32
    return %arg0, %c0_i32, %c0_i32_0 : i32, i32, i32
  }
  func.func @transform_2(%arg0: i32, %arg1: i32) -> (i32, i32) {
    %c0_i32 = arith.constant 0 : i32
    %c0_i32_0 = arith.constant 0 : i32
    %c0_i32_1 = arith.constant 0 : i32
    return %c0_i32, %c0_i32_0 : i32, i32
  }
  func.func @transform_3(%arg0: i32, %arg1: i32) -> (i32, i32) {
    %c0_i32 = arith.constant 0 : i32
    %c0_i32_0 = arith.constant 0 : i32
    %c0_i32_1 = arith.constant 0 : i32
    return %c0_i32, %c0_i32_0 : i32, i32
  }
  func.func @transform_4(%arg0: i32, %arg1: i32) -> (i32, i32, i32) {
    %c0_i32 = arith.constant 0 : i32
    %c0_i32_0 = arith.constant 0 : i32
    return %arg0, %arg1, %c0_i32 : i32, i32, i32
  }
}

</mosaic_0001>

<bundles_post_ra>
// kernel: tpu_custom_call.1
= control target key start
LH: loop header
LB: loop body
LE: loop exit
PB: predicated region body
PF: predicated region fallthrough
CT: control target
= control target key end

     0   :  { %s1626_s0 = inlined_call_operand.hbm [shape: f32[2,16,128], index: 0, kind: input, shape index: {}]   ;;  %s1627_s1 = inlined_call_operand.hbm [shape: f32[2,16,128], index: 1, kind: input, shape index: {}]   ;;  %s1628_s2 = inlined_call_operand.hbm [shape: f32[128,128], index: 2, kind: input, shape index: {}]   ;;  %s1629_s3 = inlined_call_operand.hbm [shape: f32[1,128], index: 3, kind: input, shape index: {}]   ;;  %s1630_s4 = inlined_call_operand.hbm [shape: f32[2,16,128], index: 4, kind: output, shape index: {}]  }
   0x1   :  { %1640 = sst [smem:[#allocation18_spill]] %s1626_s0 }
   0x2   :  { %1641 = sst [smem:[#allocation19_spill]] %s1628_s2 }
   0x3   :  { %1642 = sst [smem:[#allocation20_spill]] %s1629_s3 }
   0x4   :  { %9 = vsyncpa [#allocation3], 0 }
   0x5   :  { %11 = vsyncpa [#allocation3 + $0x1], 0 }
   0x6   :  { %12 = vsyncpa [#allocation6], 0 }
   0x7   :  { %14 = vsyncpa [#allocation6 + $0x1], 0 }
   0x8   :  { %15 = vsyncpa [#allocation9], 0 }
   0x9   :  { %16 = vsyncpa [#allocation4], 0 }
   0xa   :  { %18 = vsyncpa [#allocation4 + $0x1], 0  ;;  %s1295_s15 = smov 0   ;;  %s1297_s16 = smov 0  }
   0xb   :  { %s1299_s17 = smov 0   ;;  %s1301_s18 = smov 0  }
   0xc   :  { %s1303_s19 = smov 0   ;;  %s1305_s20 = smov 0  }
   0xd LB: > { %1643 = sst [smem:[#allocation16_spill]] %s1255_s19  ;;  %s1326_s21 = sadd.s32 4294967295, %s1259_s20   ;;  %s1259_s20 = sphi %s1305_s20, %s24_s20   ;;  %s1255_s19 = sphi %s1303_s19, %s1666_s19   ;;  %s1251_s18 = sphi %s1301_s18, %s1665_s18   ;;  %s1247_s17 = sphi %s1299_s17, %s1669_s17   ;;  %s1243_s16 = sphi %s1297_s16, %s1668_s16   ;;  %s1239_s15 = sphi %s1295_s15, %s1667_s15  }
   0xe   : > { %s790_s22 = sadd.s32 4294967294, %s1259_s20   ;;  %p58_p0 = scmp.ne.s32.totalorder %s1243_s16, %s1239_s15 }
   0xf   : > { %p1631_p1 = scmp.eq.s32.totalorder %s1326_s21, 0  ;;  %p158_p3 = scmp.eq.s32.totalorder %s790_s22, 1 }
  0x10   : > { %p791_p5 = scmp.ge.s32.totalorder %s1259_s20, 1  ;;  %p165_p7 = scmp.lt.s32.totalorder %s1259_s20, 3 }
  0x11   : > { %p1335_p4 = por %p1631_p1, %p58_p0  ;;  %p1340_p6 = por %p158_p3, %p58_p0 }
  0x12   : > { %p1345_p8 = pnand %p791_p5, %p165_p7  ;;  %s1261_s26 = smov [#allocation7]  }
  0x13   : > { %s1644_s23 = scalar_select %p1335_p4, 1, 0 }
  0x14   : > { %s1645_s24 = scalar_select %p1340_p6, 1, 0 }
  0x15   : > { %s177_s27 = sshll.u32 %s1261_s26, 4  ;;  %p947_p9 = pneg %p1345_p8  ;;  %s1349_s27 = int_to_ptr.vmem [resolvable:$true] %s177_s27 }
  0x16   : > { %s1262_s29 = smov [#allocation8]   ;;  %s1648_s2 = sld [smem:[#allocation19_spill]] }
  0x17   : > { %p1356_p11 = pnand %p947_p9, %p1631_p1  ;;  %s191_s30 = sshll.u32 %s1262_s29, 4  ;;  %s1360_s30 = int_to_ptr.vmem [resolvable:$true] %s191_s30 }
  0x19   : > { %p1051_p13 = pneg %p1356_p11 }
  0x1c   : > { %s1049_s7 = scalar_lea.hbm %s1648_s2, 2048 }
  0x1d   : > { %p1050_p12 = scmp.ne.s32.totalorder %s1648_s2, %s1049_s7  ;;  %p1056_p5 = scmp.lt.u32.totalorder %s1049_s7, %s1648_s2 }
  0x1f   : > { %p1052_p0 = pnand %p1051_p13, %p1050_p12 }
  0x21   : > { %p1053_p3 = pneg %p1052_p0 }
  0x23   : > { %p1058_p7 = pnand %p1056_p5, %p1053_p3 }
  0x25   : > { %1061 = shalt.err (!%p1058_p7)
}
  0x26   : > { %s1062_s12 = scalar_lea.vmem %s1349_s27, 2048  ;;  %p1070_p2 = scmp.lt.s32.totalorder %s1349_s27, %s1349_s27 }
  0x27   : > { %p1063_p9 = scmp.ne.s32.totalorder %s1349_s27, %s1062_s12  ;;  %p1071_p12 = scmp.lt.s32.totalorder %s1062_s12, %s1062_s12 }
  0x29   : > { %p1065_p10 = pnand %p1063_p9, %p1051_p13  ;;  %p1072_p0 = por %p1071_p12, %p1070_p2 }
  0x2b   : > { %p1066_p1 = pneg %p1065_p10 }
  0x2d   : > { %p1073_p6 = pnand %p1072_p0, %p1066_p1 }
  0x2f   : > { %1076 = shalt.err (!%p1073_p6)
}
  0x30   : > { %s1632_s13 = smov 128   ;;  %s1634_s14 = smov 8  }
  0x31   : > { %950 = dma.hbm_to_vmem [thread:$0]  (!%p1356_p11), %s1648_s2, 2048, %s1349_s27, [#allocation6], %s1632_s13, %s1632_s13, %s1634_s14  }
  0x32   : > { %s1649_s3 = sld [smem:[#allocation20_spill]] }
  0x38   : > { %s1077_s6 = scalar_lea.hbm %s1649_s3, 16 }
  0x39   : > { %p1078_p1 = scmp.ne.s32.totalorder %s1649_s3, %s1077_s6  ;;  %p1084_p10 = scmp.lt.u32.totalorder %s1077_s6, %s1649_s3 }
  0x3b   : > { %p1080_p2 = pnand %p1078_p1, %p1051_p13 }
  0x3d   : > { %p1081_p6 = pneg %p1080_p2 }
  0x3f   : > { %p1086_p3 = pnand %p1084_p10, %p1081_p6 }
  0x41   : > { %1089 = shalt.err (!%p1086_p3)
}
  0x42   : > { %s1090_s27 = scalar_lea.vmem %s1360_s30, 16  ;;  %s1097_s11 = scalar_lea.vmem %s1360_s30, 32 }
  0x43   : > { %p1091_p5 = scmp.ne.s32.totalorder %s1360_s30, %s1090_s27  ;;  %p1098_p12 = scmp.lt.s32.totalorder %s1360_s30, %s1360_s30 }
  0x44   : > { %p1099_p0 = scmp.lt.s32.totalorder %s1097_s11, %s1090_s27 }
  0x45   : > { %p1093_p7 = pnand %p1091_p5, %p1051_p13 }
  0x46   : > { %p1100_p1 = por %p1099_p0, %p1098_p12 }
  0x47   : > { %p1094_p9 = pneg %p1093_p7 }
  0x49   : > { %p1101_p2 = pnand %p1100_p1, %p1094_p9 }
  0x4b   : > { %1104 = shalt.err (!%p1101_p2)
}
  0x4c   : > { %953 = dma.hbm_to_vmem [thread:$0]  (!%p1356_p11), %s1649_s3, 16, %s1360_s30, [#allocation9]  }
  0x4d   : > { %s36_s26 = sadd.s32 1, %s1255_s19  ;;  %s45_s29 = sadd.s32 1, %s1247_s17 }
  0x4e   : > { %p38_p13 = scmp.ge.s32.totalorder %s36_s26, 2  ;;  %p52_p6 = scmp.ne.s32.totalorder %s1247_s17, %s1243_s16 }
  0x4f   : > { %p53_p10 = scmp.eq.s32.totalorder %s1259_s20, 0  ;;  %p967_p3 = scmp.lt.s32.totalorder %s1259_s20, 2 }
  0x50   : > { %s1671_s26 = smov (%p38_p13, %s36_s26), 0  ;;  %p1651_p7 = scmp.eq.s32.totalorder %s1326_s21, 1 }
  0x51   : > { %1650 = sst [smem:[#allocation17_spill]] %s1671_s26  ;;  %p54_p5 = por %p53_p10, %p52_p6 }
  0x52   : > { %p1428_p9 = por %p1651_p7, %p52_p6  ;;  %s40_s5 = ssub.s32 %s1255_s19, %s1671_s26 }
  0x53   : > { %s202_s6 = sand.u32 1, %s1247_s17   ;;  %p43_p12 = scmp.eq.s32.totalorder %s40_s5, 0 }
  0x54   : > { %s1652_s28 = scalar_select %p1428_p9, 1, 0 }
  0x55   : > { %s1435_s30 = sshll.u32 %s202_s6, 4  ;;  %s815_s7 = sshll.u32 %s1255_s19, 8 }
  0x56   : > { %s1439_s8 = scalar_select %p43_p12, %s1247_s17, %s45_s29  }
  0x57   : > { %s1653_s0 = sld [smem:[#allocation18_spill]]  ;;  %s206_s11 = scalar_lea.vmem [#allocation2], %s1435_s30 }
  0x58   : > { %s215_s12 = sshll.u32 %s206_s11, 4  ;;  %p1449_p11 = pnand %p967_p3, %p54_p5  ;;  %s1453_s12 = int_to_ptr.vmem [resolvable:$true] %s215_s12 }
  0x59   : > { %s1458_s9 = scalar_lea.hbm %s1627_s1, %s815_s7  ;;  %s1460_s10 = scalar_lea.sflag [#allocation3], %s202_s6 }
  0x5a   : > { %p1107_p1 = pneg %p1449_p11 }
  0x5d   : > { %s1444_s27 = scalar_lea.hbm %s1653_s0, %s815_s7  ;;  %s1110_s2 = scalar_lea.hbm %s1653_s0, 512 }
  0x5e   : > { %s1105_s13 = scalar_lea.hbm %s1444_s27, 256  ;;  %p1111_p6 = scmp.lt.u32.totalorder %s1444_s27, %s1653_s0 }
  0x5f   : > { %p1106_p0 = scmp.ne.s32.totalorder %s1444_s27, %s1105_s13  ;;  %p1112_p10 = scmp.lt.u32.totalorder %s1110_s2, %s1105_s13 }
  0x60   : > { %p1114_p5 = scmp.lt.u32.totalorder %s1105_s13, %s1444_s27 }
  0x61   : > { %p1108_p2 = pnand %p1107_p1, %p1106_p0  ;;  %p1113_p3 = por %p1112_p10, %p1111_p6 }
  0x63   : > { %p1109_p13 = pneg %p1108_p2  ;;  %p1115_p7 = por %p1114_p5, %p1113_p3 }
  0x65   : > { %p1116_p12 = pnand %p1115_p7, %p1109_p13 }
  0x67   : > { %1119 = shalt.err (!%p1116_p12)
}
  0x68   : > { %s1120_s6 = scalar_lea.vmem %s1453_s12, 256  ;;  %s1265_s14 = smov [#allocation2]  }
  0x69   : > { %p1121_p0 = scmp.ne.s32.totalorder %s1453_s12, %s1120_s6  ;;  %s1125_s7 = sshll.u32 %s1265_s14, 4  ;;  %s1126_s7 = int_to_ptr.vmem [resolvable:$false] %s1125_s7 }
  0x6a   : > { %s1127_s3 = scalar_lea.vmem %s1126_s7, 512  ;;  %p1128_p4 = scmp.lt.s32.totalorder %s1453_s12, %s1126_s7 }
  0x6b   : > { %p1123_p2 = pnand %p1121_p0, %p1107_p1  ;;  %p1129_p6 = scmp.lt.s32.totalorder %s1127_s3, %s1120_s6 }
  0x6d   : > { %p1124_p9 = pneg %p1123_p2  ;;  %p1130_p10 = por %p1129_p6, %p1128_p4 }
  0x6f   : > { %p1131_p3 = pnand %p1130_p10, %p1124_p9 }
  0x71   : > { %1134 = shalt.err (!%p1131_p3)
}
  0x72   : > { %s1655_s2 = smov 8   ;;  %s1656_s13 = smov 128  }
  0x73   : > { %957 = dma.hbm_to_vmem [thread:$0]  (!%p1449_p11), %s1444_s27, 256, %s1453_s12, %s1460_s10, %s1656_s13, %s1656_s13, %s1655_s2  }
  0x74   : > { %s229_s26 = scalar_lea.vmem [#allocation5], %s1435_s30  ;;  %s225_s5 = sand.u32 1, %s1259_s20  }
  0x75   : > { %s236_s29 = sshll.u32 %s229_s26, 4  ;;  %s1495_s11 = scalar_lea.sflag [#allocation6], %s225_s5  ;;  %s1493_s29 = int_to_ptr.vmem [resolvable:$true] %s236_s29 }
  0x76   : > { %s1135_s6 = scalar_lea.hbm %s1458_s9, 256  ;;  %s1140_s3 = scalar_lea.hbm %s1627_s1, 512 }
  0x77   : > { %p1136_p4 = scmp.ne.s32.totalorder %s1458_s9, %s1135_s6  ;;  %p1141_p5 = scmp.lt.u32.totalorder %s1458_s9, %s1627_s1 }
  0x78   : > { %p1142_p7 = scmp.lt.u32.totalorder %s1140_s3, %s1135_s6  ;;  %p1144_p0 = scmp.lt.u32.totalorder %s1135_s6, %s1458_s9 }
  0x79   : > { %p1138_p9 = pnand %p1136_p4, %p1107_p1 }
  0x7a   : > { %p1143_p12 = por %p1142_p7, %p1141_p5 }
  0x7b   : > { %p1139_p13 = pneg %p1138_p9 }
  0x7c   : > { %p1145_p2 = por %p1144_p0, %p1143_p12 }
  0x7e   : > { %p1146_p6 = pnand %p1145_p2, %p1139_p13 }
  0x80   : > { %1149 = shalt.err (!%p1146_p6)
}
  0x81   : > { %s1150_s30 = scalar_lea.vmem %s1493_s29, 256  ;;  %s1266_s27 = smov [#allocation5]  }
  0x82   : > { %p1151_p10 = scmp.ne.s32.totalorder %s1493_s29, %s1150_s30  ;;  %s1155_s12 = sshll.u32 %s1266_s27, 4  ;;  %s1156_s12 = int_to_ptr.vmem [resolvable:$false] %s1155_s12 }
  0x83   : > { %s1157_s0 = scalar_lea.vmem %s1156_s12, 512  ;;  %p1158_p9 = scmp.lt.s32.totalorder %s1493_s29, %s1156_s12 }
  0x84   : > { %p1153_p3 = pnand %p1151_p10, %p1107_p1  ;;  %p1159_p5 = scmp.lt.s32.totalorder %s1157_s0, %s1150_s30 }
  0x86   : > { %p1154_p4 = pneg %p1153_p3  ;;  %p1160_p7 = por %p1159_p5, %p1158_p9 }
  0x88   : > { %p1161_p12 = pnand %p1160_p7, %p1154_p4 }
  0x8a   : > { %1164 = shalt.err (!%p1161_p12)
}
  0x8b   : > { %960 = dma.hbm_to_vmem [thread:$0]  (!%p1449_p11), %s1458_s9, 256, %s1493_s29, %s1495_s11, %s1656_s13, %s1656_s13, %s1655_s2  }
  0x8c   : > { %248 = sbr.rel (%p1345_p8) target bundleno = 1321 (0x529), region = 36  ;;  %s1527_s19 = sand.u32 (!%p1345_p8), 1, %s1243_s16  }
  0x8d   : > { %s1530_s10 = sshll.u32 (!%p1345_p8), %s1527_s19, 4  ;;  %s251_s22 = scalar_lea.sflag (!%p1345_p8), [#allocation3], %s1527_s19 }
  0x8e   : > { %s254_s26 = scalar_lea.vmem (!%p1345_p8), [#allocation2], %s1530_s10  ;;  %p1657_p1 = scmp.ne.s32.totalorder (!%p1345_p8), %s1644_s23, 0 }
  0x93   : > { %1218 = dma.done.wait (%p1657_p1), %s251_s22, 256  }
  0x94   : > { %1220 = vsyncadd (%p1657_p1), %s251_s22, 4294967040  ;;  %s259_s25 = sand.u32 1, %s1326_s21   ;;  %s263_s2 = scalar_lea.vmem [#allocation5], %s1530_s10 }
  0x95   : > { %s260_s9 = scalar_lea.sflag [#allocation6], %s259_s25 }
  0x96   : > { %1222 = dma.done.wait (%p1657_p1), %s260_s9, 256  }
  0x97   : > { %1224 = vsyncadd (%p1657_p1), %s260_s9, 4294967040  ;;  %p1658_p8 = scmp.eq.s32.totalorder %s1326_s21, 0 }
  0x99   : > { %1226 = dma.done.wait (%p1658_p8), [#allocation6], 2048   ;;  %p1659_p11 = pmov %p1658_p8 }
  0x9a   : > { %p1660_p13 = pmov %p1658_p8 }
  0x9b   : > { %1228 = vsyncadd (%p1659_p11), [#allocation6], 4294965248 }
  0x9c   : > { %1230 = dma.done.wait (%p1660_p13), [#allocation9], 16   ;;  %p1661_p0 = pmov %p1658_p8 }
  0x9d   : > { %v1552_v0 = vld [vmem:[%s263_s2] sm:$0xff]  ;;  %v1554_v2 = vld [vmem:[%s263_s2 + $0x8] sm:$0xff]  ;;  %vm434_vm8 = vcmask 130048   ;;  %s300_s21 = scalar_lea.vmem [#allocation10], %s1530_s10  ;;  %s817_s13 = sshll.u32 %s1251_s18, 8 }
  0x9e   : > { %1232 = vsyncadd (%p1661_p0), [#allocation9], 4294967280  ;;  %v303_v1 = vld [vmem:[%s254_s26] sm:$0xff]  ;;  %v333_v3 = vmul.f32 %v1552_v0, %v1552_v0  ;;  %v304_v5 = vld [vmem:[%s254_s26 + $0x8] sm:$0xff]  ;;  %v334_v6 = vmul.f32 %v1554_v2, %v1554_v2  ;;  %v897_v59 = vpack.c.bf16 %v1554_v2, %v1552_v0  ;;  %s660_s23 = sshll.u32 %s300_s21, 4  ;;  %s1577_s11 = scalar_lea.hbm %s1630_s4, %s817_s13  ;;  %s1572_s23 = int_to_ptr.vmem [resolvable:$true] %s660_s23 }
  0x9f   : > { %v307_v4 = vmul.f32 %v303_v1, %v303_v1  ;;  %v308_v7 = vmul.f32 %v304_v5, %v304_v5  ;;  %v538_v60 = vld [vmem:[#allocation7] sm:$0xff]  ;;  %v539_v61 = vld [vmem:[#allocation7 + $0x8] sm:$0xff]  ;;  %v540_v62 = vld [vmem:[#allocation7 + $0x10] sm:$0xff]  ;;  %s645_s6 = scalar_lea.sflag [#allocation4], %s1527_s19  ;;  %s1165_s18 = scalar_lea.vmem %s1572_s23, 256 }
  0xa0   : > { %335 = vadd.xlane.f32.xlu0 %v333_v3  ;;  %v901_v63 = vpack.c.bf16 %v539_v61, %v538_v60  ;;  %p1166_p2 = scmp.ne.s32.totalorder %s1572_s23, %s1165_s18  ;;  %p1662_p6 = scmp.ne.s32.totalorder %s1652_s28, 0 }
  0xa1   : > { %309 = vadd.xlane.f32.xlu1 %v307_v4  ;;  %v542_v4 = vld [vmem:[#allocation7 + $0x20] sm:$0xff]  ;;  %s1267_s14 = smov [#allocation10]  }
  0xa2   : > { %902 = vmatprep.subr.bf16.mxu1 %v901_v63  ;;  %p1167_p10 = pnand %p1166_p2, %p1662_p6  ;;  %s1169_s7 = sshll.u32 %s1267_s14, 4  ;;  %s1170_s7 = int_to_ptr.vmem [resolvable:$false] %s1169_s7 }
  0xa3   : > { %904 = vmatpush3.bf16.msra.mxu1 %v901_v63  ;;  %s1171_s3 = scalar_lea.vmem %s1170_s7, 512  ;;  %p1172_p4 = scmp.lt.s32.totalorder %s1572_s23, %s1170_s7 }
  0xa4   : > { %337 = vadd.xlane.f32.xlu0 %v334_v6  ;;  %p1168_p3 = pneg %p1167_p10  ;;  %p1173_p9 = scmp.lt.s32.totalorder %s1171_s3, %s1165_s18 }
  0xa5   : > { %311 = vadd.xlane.f32.xlu1 %v308_v7  ;;  %v544_v7 = vld [vmem:[#allocation7 + $0x30] sm:$0xff] }
  0xa6   : > { %p1174_p5 = por %p1173_p9, %p1172_p4 }
  0xa8   : > { %p1175_p7 = pnand %p1174_p5, %p1168_p3 }
 0x12d   : > { %v336_v8 = vpop.xlane.xlu0 %335 }
 0x12e   : > { %v310_v9 = vpop.xlane.xlu1 %309  ;;  %1025 = vrsqrt.f32 %v336_v8  ;;  %vm341_vm0 = vcmp.eq.f32.partialorder %v336_v8, inf  ;;  %v344_v15 = vand.u32 2147483648, %v336_v8  ;;  %vm343_vm1 = vcmp.eq.f32.partialorder %v336_v8, 0.0 }
 0x12f   : > { %1027 = vrsqrt.f32 %v310_v9  ;;  %vm315_vm2 = vcmp.eq.f32.partialorder %v310_v9, inf  ;;  %v318_v18 = vand.u32 2147483648, %v310_v9  ;;  %vm317_vm3 = vcmp.eq.f32.partialorder %v310_v9, 0.0 }
 0x131   : > { %v338_v10 = vpop.xlane.xlu0 %337 }
 0x132   : > { %v312_v11 = vpop.xlane.xlu1 %311  ;;  %1029 = vrsqrt.f32 %v338_v10  ;;  %vm348_vm4 = vcmp.eq.f32.partialorder %v338_v10, inf  ;;  %v351_v26 = vand.u32 2147483648, %v338_v10  ;;  %vm350_vm5 = vcmp.eq.f32.partialorder %v338_v10, 0.0 }
 0x133   : > { %1031 = vrsqrt.f32 %v312_v11  ;;  %vm322_vm6 = vcmp.eq.f32.partialorder %v312_v11, inf  ;;  %v325_v33 = vand.u32 2147483648, %v312_v11  ;;  %vm324_vm7 = vcmp.eq.f32.partialorder %v312_v11, 0.0 }
 0x138   : > { %v1026_v12 = vpop.eup %1025 }
 0x139   : > { %v1028_v13 = vpop.eup %1027  ;;  %v340_v14 = vmul.f32 %v1026_v12, %v336_v8  ;;  %v549_v12 = vld [vmem:[#allocation7 + $0x58] sm:$0xff] }
 0x13a   : > { %v314_v16 = vmul.f32 %v1028_v13, %v310_v9 }
 0x13b   : > { %v342_v17 = vsel %vm341_vm0, %v336_v8, %v340_v14  ;;  %v545_v8 = vld [vmem:[#allocation7 + $0x38] sm:$0xff]  ;;  %v550_v14 = vld [vmem:[#allocation7 + $0x60] sm:$0xff] }
 0x13c   : > { %v1030_v19 = vpop.eup %1029  ;;  %v345_v20 = vsel %vm343_vm1, %v344_v15, %v342_v17  ;;  %v316_v21 = vsel %vm315_vm2, %v310_v9, %v314_v16  ;;  %v913_v9 = vpack.c.bf16 %v545_v8, %v544_v7  ;;  %v551_v15 = vld [vmem:[#allocation7 + $0x68] sm:$0xff]  ;;  %v552_v17 = vld [vmem:[#allocation7 + $0x70] sm:$0xff] }
 0x13d   : > { %v1032_v22 = vpop.eup %1031  ;;  %v353_v23 = vadd.f32 1e-05, %v345_v20  ;;  %v347_v24 = vmul.f32 %v1030_v19, %v338_v10  ;;  %v319_v25 = vsel %vm317_vm3, %v318_v18, %v316_v21  ;;  %v925_v16 = vpack.c.bf16 %v551_v15, %v550_v14  ;;  %v553_v18 = vld [vmem:[#allocation7 + $0x78] sm:$0xff] }
 0x13e   : > { %v321_v27 = vmul.f32 %v1032_v22, %v312_v11  ;;  %v327_v28 = vadd.f32 1e-05, %v319_v25  ;;  %v929_v19 = vpack.c.bf16 %v553_v18, %v552_v17 }
 0x13f   : > { %v349_v29 = vsel %vm348_vm4, %v338_v10, %v347_v24 }
 0x140   : > { %v352_v30 = vsel %vm350_vm5, %v351_v26, %v349_v29  ;;  %1033 = vrcp.f32 %v327_v28  ;;  %v323_v32 = vsel %vm322_vm6, %v312_v11, %v321_v27  ;;  %v548_v11 = vld [vmem:[#allocation7 + $0x50] sm:$0xff]  ;;  %v809_v28 = vld [vmem:[#allocation8] ss:$0 sm:$0xff] }
 0x141   : > { %v354_v31 = vadd.f32 1e-05, %v352_v30  ;;  %1035 = vrcp.f32 %v353_v23  ;;  %v326_v34 = vsel %vm324_vm7, %v325_v33, %v323_v32  ;;  %v921_v13 = vpack.c.bf16 %v549_v12, %v548_v11 }
 0x142   : > { %v328_v35 = vadd.f32 1e-05, %v326_v34 }
 0x143   : > { %1037 = vrcp.f32 %v354_v31 }
 0x144   : > { %1039 = vrcp.f32 %v328_v35 }
 0x14a   : > { %v1034_v36 = vpop.eup %1033 }
 0x14b   : > { %v1036_v37 = vpop.eup %1035  ;;  %v330_v38 = vmul.f32 %v1034_v36, %v303_v1  ;;  %v541_v1 = vld [vmem:[#allocation7 + $0x18] sm:$0xff] }
 0x14c   : > { %v356_v40 = vmul.f32 %v1036_v37, %v1552_v0  ;;  %v905_v3 = vpack.c.bf16 %v541_v1, %v540_v62  ;;  %v546_v0 = vld [vmem:[#allocation7 + $0x40] sm:$0xff] }
 0x14d   : > { %v1038_v39 = vpop.eup %1037  ;;  %848 = vmatprep.mubr.f32.mxu0 %v330_v38 }
 0x14e   : > { %v358_v41 = vmul.f32 %v1038_v39, %v1554_v2  ;;  %v1040_v43 = vpop.eup %1039  ;;  %906 = vmatprep.subr.bf16.mxu1 %v905_v3  ;;  %v547_v2 = vld [vmem:[#allocation7 + $0x48] sm:$0xff] }
 0x14f   : > { %v332_v44 = vmul.f32 %v1040_v43, %v304_v5  ;;  %v543_v5 = vld [vmem:[#allocation7 + $0x28] sm:$0xff]  ;;  %908 = vmatpush3.bf16.msra.mxu1 %v905_v3  ;;  %v917_v10 = vpack.c.bf16 %v547_v2, %v546_v0 }
 0x150   : > { %v893_v42 = vpack.c.bf16 %v358_v41, %v356_v40  ;;  %v909_v6 = vpack.c.bf16 %v543_v5, %v542_v4 }
 0x152   : > { %894 = vmatprep.subr.bf16.mxu0 %v893_v42  ;;  %910 = vmatprep.subr.bf16.mxu1 %v909_v6 }
 0x153   : > { %896 = vmatpush3.bf16.xpose.msra.mxu0 %v893_v42  ;;  %912 = vmatpush3.bf16.msra.mxu1 %v909_v6 }
 0x154   : > { %898 = vmatprep.subr.bf16.mxu0 %v897_v59  ;;  %914 = vmatprep.subr.bf16.mxu1 %v913_v9 }
 0x157   : > { %916 = vmatpush3.bf16.msra.mxu1 %v913_v9 }
 0x158   : > { %918 = vmatprep.subr.bf16.mxu1 %v917_v10 }
 0x15a   : > { %849 = vmatmul.mubr.f32.vlgmr.msra.gmra.mrb[0].mxu0 %v332_v44 }
 0x15b   : > { %900 = vmatpush3.bf16.msra.mxu0 %v897_v59  ;;  %920 = vmatpush3.bf16.msra.mxu1 %v917_v10 }
 0x15c   : > { %922 = vmatprep.subr.bf16.mxu1 %v921_v13 }
 0x15f   : > { %924 = vmatpush3.bf16.msra.mxu1 %v921_v13 }
 0x160   : > { %926 = vmatprep.subr.bf16.mxu1 %v925_v16 }
 0x163   : > { %928 = vmatpush3.bf16.msra.mxu1 %v925_v16 }
 0x164   : > { %930 = vmatprep.subr.bf16.mxu1 %v929_v19 }
 0x167   : > { %932 = vmatpush3.bf16.msra.mxu1 %v929_v19 }
 0x22d   : > { %v850_v45 = vpop.f32.mrb[0].mxu0 }
 0x22e   : > { %v425_v46 = vpop.f32.mrb[1].mxu0  ;;  %v438_v47 = vsel %vm434_vm8, %v850_v45, -inf }
 0x22f   : > { %439 = vmax.xlane.f32.xlu1 %v438_v47  ;;  %v435_v48 = vsel %vm434_vm8, %v425_v46, -inf }
 0x230   : > { %436 = vmax.xlane.f32.xlu0 %v435_v48 }
 0x2bc   : > { %v440_v49 = vpop.xlane.xlu1 %439 }
 0x2bd   : > { %v442_v50 = vsub.f32 %v850_v45, %v440_v49  ;;  %v437_v51 = vpop.xlane.xlu0 %436 }
 0x2be   : > { %v441_v52 = vsub.f32 %v425_v46, %v437_v51 }
 0x2bf   : > { %v445_v53 = vmul.f32 1.442695, %v442_v50 }
 0x2c0   : > { %v443_v54 = vmul.f32 1.442695, %v441_v52 }
 0x2c1   : > { %1041 = vpow2.f32 %v445_v53 }
 0x2c2   : > { %1043 = vpow2.f32 %v443_v54 }
 0x2cb   : > { %v1042_v55 = vpop.eup %1041 }
 0x2cc   : > { %v1044_v56 = vpop.eup %1043  ;;  %v450_v57 = vsel %vm434_vm8, %v1042_v55, 0.0 }
 0x2cd   : > { %451 = vadd.xlane.f32.xlu1 %v450_v57  ;;  %v447_v58 = vsel %vm434_vm8, %v1044_v56, 0.0 }
 0x2ce   : > { %448 = vadd.xlane.f32.xlu0 %v447_v58 }
 0x35a   : > { %v452_v20 = vpop.xlane.xlu1 %451 }
 0x35b   : > { %1045 = vrcp.f32 %v452_v20  ;;  %v449_v21 = vpop.xlane.xlu0 %448 }
 0x35c   : > { %1047 = vrcp.f32 %v449_v21 }
 0x365   : > { %v1046_v22 = vpop.eup %1045 }
 0x366   : > { %v1048_v23 = vpop.eup %1047  ;;  %v456_v25 = vmul.f32 %v1046_v22, %v1042_v55 }
 0x367   : > { %v454_v24 = vmul.f32 %v1048_v23, %v1044_v56 }
 0x369   : > { %855 = vmatprep.mubr.msk.f32.mxu0 %vm434_vm8, %v454_v24 }
 0x36a   : > { %856 = vmatmul.mubr.msk.f32.vlgmr.msra.gmra.mrb[2].mxu0 %vm434_vm8, %v456_v25 }
 0x43d   : > { %v857_v26 = vpop.f32.mrb[2].mxu0 }
 0x43e   : > { %v529_v27 = vpop.f32.mrb[3].mxu0 }
 0x43f   : > { %890 = vmatprep.mubr.f32.mxu1 %v529_v27 }
 0x440   : > { %891 = vmatmul.mubr.f32.vlgmr.msra.gmra.mrb[0].mxu1 %v857_v26 }
 0x513   : > { %v892_v29 = vpop.f32.mrb[0].mxu1 }
 0x514   : > { %v633_v30 = vadd.f32 %v892_v29, %v809_v28  ;;  %v627_v31 = vpop.f32.mrb[1].mxu1 }
 0x515   : > { %v628_v32 = vadd.f32 %v809_v28, %v627_v31 }
 0x516   : > { %vm637_vm9 = vcmp.ge.f32.partialorder %v633_v30, 0.0  ;;  %v639_v33 = vmul.f32 0.2, %v633_v30 }
 0x517   : > { %vm636_vm10 = vcmp.ge.f32.partialorder %v628_v32, 0.0  ;;  %v638_v34 = vmul.f32 0.2, %v628_v32 }
 0x518   : > { %v641_v35 = vsel %vm637_vm9, %v633_v30, %v639_v33 }
 0x519   : > { %643 = vst [vmem:[%s300_s21 + $0x8] sm:$0xff] %v641_v35  ;;  %v640_v36 = vsel %vm636_vm10, %v628_v32, %v638_v34 }
 0x51a   : > { %642 = vst [vmem:[%s300_s21] sm:$0xff] %v640_v36 }
 0x51b   : > { %1178 = shalt.err (!%p1175_p7)
}
 0x51c   : > { %s1179_s30 = scalar_lea.hbm %s1577_s11, 256  ;;  %s1183_s0 = scalar_lea.hbm %s1630_s4, 512 }
 0x51d   : > { %p1180_p12 = scmp.ne.s32.totalorder %s1577_s11, %s1179_s30  ;;  %p1184_p11 = scmp.lt.u32.totalorder %s1577_s11, %s1630_s4 }
 0x51e   : > { %p1185_p13 = scmp.lt.u32.totalorder %s1183_s0, %s1179_s30  ;;  %p1187_p2 = scmp.lt.u32.totalorder %s1179_s30, %s1577_s11 }
 0x51f   : > { %p1181_p1 = pnand %p1180_p12, %p1662_p6 }
 0x520   : > { %p1186_p0 = por %p1185_p13, %p1184_p11 }
 0x521   : > { %p1182_p8 = pneg %p1181_p1 }
 0x522   : > { %p1188_p10 = por %p1187_p2, %p1186_p0 }
 0x524   : > { %p1189_p3 = pnand %p1188_p10, %p1182_p8 }
 0x526   : > { %1192 = shalt.err (!%p1189_p3)
}
 0x527   : > { %s1268_s26 = smov 128   ;;  %s1269_s25 = smov 8  }
 0x528   : > { %945 = dma.vmem_to_hbm [thread:$0]  (%p1662_p6), %s1572_s23, 256, %s1577_s11, %s645_s6, %s1268_s26, %s1268_s26, %s1269_s25  }
 0x529 PF: > { %s675_s9 = sand.u32 1, %s1239_s15   ;;  %p1663_p4 = scmp.ne.s32.totalorder %s1645_s24, 0 }
 0x52a   : > { %p1664_p9 = scmp.ge.s32.totalorder %s1259_s20, 2  ;;  %s676_s2 = scalar_lea.sflag [#allocation4], %s675_s9 }
 0x52c   : > { %p962_p5 = pnand %p1664_p9, %p1663_p4 }
 0x52e   : > { %1234 = dma.done.wait (!%p962_p5), %s676_s2, 256  }
 0x52f   : > { %1236 = vsyncadd (!%p962_p5), %s676_s2, 4294967040  ;;  %s24_s20 = sadd.s32 1, %s1259_s20   ;;  %s1665_s18 = sld [smem:[#allocation16_spill]] }
 0x530   : > { %p21_p7 = scmp.ge.s32.totalorder %s24_s20, 4   ;;  %s1666_s19 = sld [smem:[#allocation17_spill]] }
 0x531   : > { %s1667_s15 = smov %s1243_s16  ;;  %s1668_s16 = smov %s1247_s17 }
 0x532   : > { %s1669_s17 = smov %s1439_s8  ;;  %23 = sbr.rel (!%p21_p7) target bundleno = 13 (0xd), region = 102 }
 0x539   :  { %681 = vsyncpa [#allocation3], 1 }
 0x53a   :  { %683 = vsyncpa [#allocation3 + $0x1], 1 }
 0x53b   :  { %684 = vsyncpa [#allocation6], 1 }
 0x53c   :  { %686 = vsyncpa [#allocation6 + $0x1], 1 }
 0x53d   :  { %687 = vsyncpa [#allocation9], 1 }
 0x53e   :  { %688 = vsyncpa [#allocation4], 1 }
 0x53f   :  { %690 = vsyncpa [#allocation4 + $0x1], 1 }

</bundles_post_ra>
